<compile_context>
chip_gen: v6e
topology: v6e:2x2x1
jax: 0.10.0
libtpu: 0.0.40
codegen_flags: <defaults>
</compile_context>

<pallas_src>
import math

import jax
import jax.numpy as jnp
from jax import lax
from jax.experimental import pallas as pl
from jax.experimental.pallas import tpu as pltpu


def _round_up(a, b):
    return -(-a // b) * b


def _fnn_epilogue(x, w1, b1, w2, b2, wfix, out_dtype):
    # fnn: Linear -> ReLU -> Linear (MXU, f32 accumulation), then
    # epilogue: r + r * (r * w_fixed)  (lane-dense VPU ops).
    h = jnp.dot(x, w1, preferred_element_type=jnp.float32) + b1
    h = jnp.maximum(h, 0.0)
    r = jnp.dot(h, w2, preferred_element_type=jnp.float32) + b2
    return (r + r * (r * wfix)).astype(out_dtype)


def mixed_effect_kernel_gather(ids_ref, emb_ref, x_ref, w1_ref, b1_ref,
                               w2_ref, b2_ref, o_ref):
    # Rebuild the (tile_p, out_p) w_fixed block on the MXU from tiny ids.
    ids = ids_ref[...]                                          # (tile_p, 1) i32
    ncat = emb_ref.shape[0]
    col = lax.broadcasted_iota(jnp.int32, (ids.shape[0], ncat), 1)
    onehot = (ids == col).astype(jnp.float32)                   # (tile_p, ncat)
    wfix = jnp.dot(onehot, emb_ref[...].astype(jnp.float32),
                   preferred_element_type=jnp.float32)          # (tile_p, out_p)
    o_ref[...] = _fnn_epilogue(x_ref[...], w1_ref[...], b1_ref[...],
                               w2_ref[...], b2_ref[...], wfix, o_ref.dtype)


def mixed_effect_kernel_wf(wf_ref, x_ref, w1_ref, b1_ref, w2_ref, b2_ref, o_ref):
    # Fallback: w_fixed is streamed pre-materialized (row granularity).
    o_ref[...] = _fnn_epilogue(x_ref[...], w1_ref[...], b1_ref[...],
                               w2_ref[...], b2_ref[...],
                               wf_ref[...].astype(jnp.float32), o_ref.dtype)


def mixed_effect_forward(x, z, w1, b1, w2, b2, emb, *, tile_rows=2048,
                         use_bf16_inputs=False):
    """Forward pass of MixedEffectModel.

    x: (B, S, input_dim) f32, z: (B,) int, Linear weights stored (in, out)
    so x @ W + b == PyTorch's x @ W.T + b.  Returns (B, S, output_dim) f32.
    """
    B, S, input_dim = x.shape
    hidden_dim = w1.shape[1]
    output_dim = w2.shape[1]
    num_categories = emb.shape[0]
    rows = B * S

    # --- lane-dense row packing factor (lcm-based) ----------------------------
    pack = 1
    if output_dim < 128:
        p = math.lcm(output_dim, 128) // output_dim
        # Keep block-diagonal weight copies small.
        if p * max(input_dim, hidden_dim, output_dim) <= 1024:
            pack = p
    in_p, hid_p, out_p = pack * input_dim, pack * hidden_dim, pack * output_dim

    # In-kernel embedding gather only valid when all lanes of a packed row
    # belong to one batch element.
    use_gather = (S % pack == 0)

    # --- tile size from a VMEM budget -----------------------------------------
    rows_p = pl.cdiv(rows, pack)
    ncat_pad = _round_up(num_categories, 8)
    weights_bytes = 4 * (in_p * hid_p + hid_p + hid_p * out_p + out_p
                         + ncat_pad * out_p)

    def _vmem_need(t):
        stream_lanes = in_p + out_p + (1 if use_gather else out_p)
        streams = 2 * t * stream_lanes * 4            # double-buffered streams
        interm = t * (hid_p + out_p + ncat_pad) * 4   # in-kernel intermediates
        return streams + interm + 2 * weights_bytes

    tile_p = max(8, _round_up(min(tile_rows, _round_up(rows_p, 8)), 8))
    VMEM_BUDGET = 40 * 1024 * 1024                    # fits v5e/v6e/v7x scoped VMEM
    while tile_p > 8 and _vmem_need(tile_p) > VMEM_BUDGET:
        tile_p = max(8, _round_up(tile_p // 2, 8))
    vmem_limit = int(min(60 * 1024 * 1024, max(2 * _vmem_need(tile_p),
                                               32 * 1024 * 1024)))

    num_tiles = pl.cdiv(rows_p, tile_p)
    rows_p_pad = num_tiles * tile_p
    rows_pad = rows_p_pad * pack

    # --- activations: pad only if needed, fold `pack` rows into lanes ---------
    x2 = x.reshape(rows, input_dim)
    if rows_pad != rows:
        x2 = jnp.pad(x2, ((0, rows_pad - rows), (0, 0)))
    x2 = x2.reshape(rows_p_pad, in_p)

    # --- block-diagonal weight copies (identity when pack == 1) ---------------
    # TODO(synk): in a real model, precompute w1p/b1p/w2p/b2p once, not per call.
    if pack > 1:
        eye = jnp.eye(pack, dtype=w1.dtype)
        w1p = jnp.kron(eye, w1)                       # (pack*in,  pack*hid)
        w2p = jnp.kron(eye, w2)                       # (pack*hid, pack*out)
        b1p = jnp.tile(b1, (1, pack))                 # (1, pack*hid)
        b2p = jnp.tile(b2, (1, pack))                 # (1, pack*out)
    else:
        w1p, w2p, b1p, b2p = w1, w2, b1, b2

    mm_dtype = jnp.bfloat16 if use_bf16_inputs else x2.dtype
    x2 = x2.astype(mm_dtype)
    w1p = w1p.astype(mm_dtype)
    w2p = w2p.astype(mm_dtype)
    b1p = b1p.astype(jnp.float32)
    b2p = b2p.astype(jnp.float32)

    common_specs = [
        pl.BlockSpec((tile_p, in_p), lambda i: (i, 0)),      # x rows (streamed)
        pl.BlockSpec((in_p, hid_p), lambda i: (0, 0)),       # W1 (resident)
        pl.BlockSpec((1, hid_p), lambda i: (0, 0)),          # b1
        pl.BlockSpec((hid_p, out_p), lambda i: (0, 0)),      # W2 (resident)
        pl.BlockSpec((1, out_p), lambda i: (0, 0)),          # b2
    ]
    out_spec = pl.BlockSpec((tile_p, out_p), lambda i: (i, 0))

    flops = (2 * rows_p_pad * (in_p * hid_p + hid_p * out_p)
             + (2 * rows_p_pad * ncat_pad * out_p if use_gather else 0)
             + 3 * rows_p_pad * out_p)

    if use_gather:
        # Per-packed-row category id (tiny int32 stream) + resident packed table.
        pb = (jnp.arange(rows_p, dtype=jnp.int32) * pack) // S
        ids = z.astype(jnp.int32)[pb]
        if rows_p_pad != rows_p:
            ids = jnp.pad(ids, (0, rows_p_pad - rows_p))
        ids = ids.reshape(rows_p_pad, 1)
        emb_p = jnp.tile(emb, (1, pack)) if pack > 1 else emb
        if ncat_pad != num_categories:
            emb_p = jnp.pad(emb_p, ((0, ncat_pad - num_categories), (0, 0)))
        emb_p = emb_p.astype(jnp.float32)

        bytes_accessed = 4 * (rows_p_pad * (in_p + out_p + 1)
                              + in_p * hid_p + hid_p + hid_p * out_p + out_p
                              + ncat_pad * out_p)

        out = pl.pallas_call(
            mixed_effect_kernel_gather,
            out_shape=jax.ShapeDtypeStruct((rows_p_pad, out_p), jnp.float32),
            grid=(num_tiles,),
            in_specs=[
                pl.BlockSpec((tile_p, 1), lambda i: (i, 0)),          # ids
                pl.BlockSpec((ncat_pad, out_p), lambda i: (0, 0)),    # emb table
            ] + common_specs,
            out_specs=out_spec,
            compiler_params=pltpu.CompilerParams(
                dimension_semantics=("parallel",),
                vmem_limit_bytes=vmem_limit),
            cost_estimate=pl.CostEstimate(
                flops=int(flops), transcendentals=0,
                bytes_accessed=int(bytes_accessed)),
        )(ids, emb_p, x2, w1p, b1p, w2p, b2p)
    else:
        # Fallback: materialize the per-row w_fixed stream (packed rows may
        # straddle batch elements, which row-granularity packing handles).
        wf = jnp.broadcast_to(emb[z][:, None, :], (B, S, output_dim))
        wf = wf.reshape(rows, output_dim)
        if rows_pad != rows:
            wf = jnp.pad(wf, ((0, rows_pad - rows), (0, 0)))
        wf = wf.reshape(rows_p_pad, out_p).astype(jnp.float32)

        bytes_accessed = 4 * (rows_p_pad * (in_p + 2 * out_p)
                              + in_p * hid_p + hid_p + hid_p * out_p + out_p)

        out = pl.pallas_call(
            mixed_effect_kernel_wf,
            out_shape=jax.ShapeDtypeStruct((rows_p_pad, out_p), jnp.float32),
            grid=(num_tiles,),
            in_specs=[
                pl.BlockSpec((tile_p, out_p), lambda i: (i, 0)),      # w_fixed
            ] + common_specs,
            out_specs=out_spec,
            compiler_params=pltpu.CompilerParams(
                dimension_semantics=("parallel",),
                vmem_limit_bytes=vmem_limit),
            cost_estimate=pl.CostEstimate(
                flops=int(flops), transcendentals=0,
                bytes_accessed=int(bytes_accessed)),
        )(wf, x2, w1p, b1p, w2p, b2p)

    # unpack lanes -> rows, drop padding, restore (B, S, output_dim)
    out = out.reshape(rows_pad, output_dim)[:rows]
    return out.reshape(B, S, output_dim)


def _reference(x, z, w1, b1, w2, b2, emb):
    h = jnp.maximum(x @ w1 + b1[0], 0.0)
    r = h @ w2 + b2[0]
    w = emb[z][:, None, :]                         # (B,1,out) broadcast over S
    return r + r * (r * w)


if __name__ == "__main__":
    input_dim, hidden_dim, output_dim = 32, 32, 32
    num_categories = 8

    key = jax.random.PRNGKey(0)
    k1, k2, k3, k4, k5, kx, kz, kx2, kz2 = jax.random.split(key, 9)

    # Parameters (Linear weights stored (in, out) so x @ W + b == torch x @ W.T + b).
    w1 = jax.random.normal(k1, (input_dim, hidden_dim), jnp.float32) * 0.1
    b1 = jax.random.normal(k2, (1, hidden_dim), jnp.float32) * 0.1
    w2 = jax.random.normal(k3, (hidden_dim, output_dim), jnp.float32) * 0.1
    b2 = jax.random.normal(k4, (1, output_dim), jnp.float32) * 0.1
    emb = jax.random.normal(k5, (num_categories, output_dim), jnp.float32)

    # --- main case: S divisible by pack -> in-kernel embedding gather path ----
    B, S = 2, 8
    x = jax.random.normal(kx, (B, S, input_dim), jnp.float32)
    z = jax.random.randint(kz, (B,), 0, num_categories, dtype=jnp.int32)

    out = mixed_effect_forward(x, z, w1, b1, w2, b2, emb)
    out = jax.block_until_ready(out)
    ref = _reference(x, z, w1, b1, w2, b2, emb)
    assert out.shape == (B, S, output_dim)
    assert jnp.allclose(out, ref, atol=1e-5, rtol=1e-5), "mismatch (gather path)"

    # --- fallback case: S not divisible by pack -> streamed w_fixed path ------
    B2, S2 = 2, 6
    x_b = jax.random.normal(kx2, (B2, S2, input_dim), jnp.float32)
    z_b = jax.random.randint(kz2, (B2,), 0, num_categories, dtype=jnp.int32)

    out_b = mixed_effect_forward(x_b, z_b, w1, b1, w2, b2, emb)
    out_b = jax.block_until_ready(out_b)
    ref_b = _reference(x_b, z_b, w1, b1, w2, b2, emb)
    assert out_b.shape == (B2, S2, output_dim)
    assert jnp.allclose(out_b, ref_b, atol=1e-5, rtol=1e-5), "mismatch (wf path)"

    print("KERNEL_OK")
</pallas_src>

<mosaic_0001>
module attributes {stable_mosaic.version = 11 : i64} {
  func.func @mixed_effect_kernel_gather(%arg0: i32, %arg1: memref<8x1xi32, #tpu.memory_space<vmem>>, %arg2: memref<8x128xf32, #tpu.memory_space<vmem>>, %arg3: memref<8x128xf32, #tpu.memory_space<vmem>>, %arg4: memref<128x128xf32, #tpu.memory_space<vmem>>, %arg5: memref<1x128xf32, #tpu.memory_space<vmem>>, %arg6: memref<128x128xf32, #tpu.memory_space<vmem>>, %arg7: memref<1x128xf32, #tpu.memory_space<vmem>>, %arg8: memref<8x128xf32, #tpu.memory_space<vmem>>) attributes {dimension_semantics = [#tpu.dimension_semantics<parallel>], iteration_bounds = array<i64: 1>, scalar_prefetch = 0 : i64, scratch_operands = 0 : i64, tpu.core_type = #tpu.core_type<tc>, window_params = [{transform_indices = @transform_0, window_bounds = array<i64: 8, 1>}, {pipeline_mode = #tpu.pipeline_mode<synchronous>, transform_indices = @transform_1, window_bounds = array<i64: 8, 128>}, {transform_indices = @transform_2, window_bounds = array<i64: 8, 128>}, {pipeline_mode = #tpu.pipeline_mode<synchronous>, transform_indices = @transform_3, window_bounds = array<i64: 128, 128>}, {pipeline_mode = #tpu.pipeline_mode<synchronous>, transform_indices = @transform_4, window_bounds = array<i64: 1, 128>}, {pipeline_mode = #tpu.pipeline_mode<synchronous>, transform_indices = @transform_5, window_bounds = array<i64: 128, 128>}, {pipeline_mode = #tpu.pipeline_mode<synchronous>, transform_indices = @transform_6, window_bounds = array<i64: 1, 128>}, {transform_indices = @transform_7, window_bounds = array<i64: 8, 128>}]} {
    %c0 = arith.constant 0 : index
    %c0_0 = arith.constant 0 : index
    %0 = vector.load %arg1[%c0, %c0_0] : memref<8x1xi32, #tpu.memory_space<vmem>>, vector<8x1xi32>
    %1 = tpu.iota {dimensions = array<i32: 1>} : vector<8x8xi32>
    %2 = vector.broadcast %0 : vector<8x1xi32> to vector<8x8xi32>
    %3 = arith.cmpi eq, %2, %1 : vector<8x8xi32>
    %4 = arith.extui %3 : vector<8x8xi1> to vector<8x8xi32>
    %5 = arith.sitofp %4 : vector<8x8xi32> to vector<8x8xf32>
    %c0_1 = arith.constant 0 : index
    %c0_2 = arith.constant 0 : index
    %6 = vector.load %arg2[%c0_1, %c0_2] : memref<8x128xf32, #tpu.memory_space<vmem>>, vector<8x128xf32>
    %cst = arith.constant dense<0.000000e+00> : vector<8x128xf32>
    %7 = tpu.matmul %5, %6, %cst {dimension_numbers = #tpu.dot_dimension_numbers<[1], [0], [0], [1], [0, 0, 1, 1], [], []>} : vector<8x8xf32>, vector<8x128xf32>, vector<8x128xf32> -> vector<8x128xf32>
    %c0_3 = arith.constant 0 : index
    %c0_4 = arith.constant 0 : index
    %8 = vector.load %arg3[%c0_3, %c0_4] : memref<8x128xf32, #tpu.memory_space<vmem>>, vector<8x128xf32>
    %c0_5 = arith.constant 0 : index
    %c0_6 = arith.constant 0 : index
    %9 = vector.load %arg4[%c0_5, %c0_6] : memref<128x128xf32, #tpu.memory_space<vmem>>, vector<128x128xf32>
    %c0_7 = arith.constant 0 : index
    %c0_8 = arith.constant 0 : index
    %10 = vector.load %arg5[%c0_7, %c0_8] : memref<1x128xf32, #tpu.memory_space<vmem>>, vector<1x128xf32>
    %c0_9 = arith.constant 0 : index
    %c0_10 = arith.constant 0 : index
    %11 = vector.load %arg6[%c0_9, %c0_10] : memref<128x128xf32, #tpu.memory_space<vmem>>, vector<128x128xf32>
    %c0_11 = arith.constant 0 : index
    %c0_12 = arith.constant 0 : index
    %12 = vector.load %arg7[%c0_11, %c0_12] : memref<1x128xf32, #tpu.memory_space<vmem>>, vector<1x128xf32>
    %cst_13 = arith.constant dense<0.000000e+00> : vector<8x128xf32>
    %13 = tpu.matmul %8, %9, %cst_13 {dimension_numbers = #tpu.dot_dimension_numbers<[1], [0], [0], [1], [0, 0, 1, 1], [], []>} : vector<8x128xf32>, vector<128x128xf32>, vector<8x128xf32> -> vector<8x128xf32>
    %14 = vector.broadcast %10 : vector<1x128xf32> to vector<8x128xf32>
    %15 = arith.addf %13, %14 : vector<8x128xf32>
    %cst_14 = arith.constant 0.000000e+00 : f32
    %16 = vector.broadcast %cst_14 : f32 to vector<8x128xf32>
    %17 = arith.maximumf %15, %16 : vector<8x128xf32>
    %cst_15 = arith.constant dense<0.000000e+00> : vector<8x128xf32>
    %18 = tpu.matmul %17, %11, %cst_15 {dimension_numbers = #tpu.dot_dimension_numbers<[1], [0], [0], [1], [0, 0, 1, 1], [], []>} : vector<8x128xf32>, vector<128x128xf32>, vector<8x128xf32> -> vector<8x128xf32>
    %19 = vector.broadcast %12 : vector<1x128xf32> to vector<8x128xf32>
    %20 = arith.addf %18, %19 : vector<8x128xf32>
    %21 = arith.mulf %20, %7 : vector<8x128xf32>
    %22 = arith.mulf %20, %21 : vector<8x128xf32>
    %23 = arith.addf %20, %22 : vector<8x128xf32>
    %c0_16 = arith.constant 0 : index
    %c0_17 = arith.constant 0 : index
    %24 = vector.load %arg8[%c0_16, %c0_17] : memref<8x128xf32, #tpu.memory_space<vmem>>, vector<8x128xf32>
    tpu.vector_store %arg8[%c0_16, %c0_17], %23 {strides = array<i32>} : memref<8x128xf32, #tpu.memory_space<vmem>>, vector<8x128xf32>,
    return
  }
  func.func @transform_0(%arg0: i32) -> (i32, i32) {
    %c0_i32 = arith.constant 0 : i32
    %c0_i32_0 = arith.constant 0 : i32
    return %arg0, %c0_i32 : i32, i32
  }
  func.func @transform_1(%arg0: i32) -> (i32, i32) {
    %c0_i32 = arith.constant 0 : i32
    %c0_i32_0 = arith.constant 0 : i32
    %c0_i32_1 = arith.constant 0 : i32
    return %c0_i32, %c0_i32_0 : i32, i32
  }
  func.func @transform_2(%arg0: i32) -> (i32, i32) {
    %c0_i32 = arith.constant 0 : i32
    %c0_i32_0 = arith.constant 0 : i32
    return %arg0, %c0_i32 : i32, i32
  }
  func.func @transform_3(%arg0: i32) -> (i32, i32) {
    %c0_i32 = arith.constant 0 : i32
    %c0_i32_0 = arith.constant 0 : i32
    %c0_i32_1 = arith.constant 0 : i32
    return %c0_i32, %c0_i32_0 : i32, i32
  }
  func.func @transform_4(%arg0: i32) -> (i32, i32) {
    %c0_i32 = arith.constant 0 : i32
    %c0_i32_0 = arith.constant 0 : i32
    %c0_i32_1 = arith.constant 0 : i32
    return %c0_i32, %c0_i32_0 : i32, i32
  }
  func.func @transform_5(%arg0: i32) -> (i32, i32) {
    %c0_i32 = arith.constant 0 : i32
    %c0_i32_0 = arith.constant 0 : i32
    %c0_i32_1 = arith.constant 0 : i32
    return %c0_i32, %c0_i32_0 : i32, i32
  }
  func.func @transform_6(%arg0: i32) -> (i32, i32) {
    %c0_i32 = arith.constant 0 : i32
    %c0_i32_0 = arith.constant 0 : i32
    %c0_i32_1 = arith.constant 0 : i32
    return %c0_i32, %c0_i32_0 : i32, i32
  }
  func.func @transform_7(%arg0: i32) -> (i32, i32) {
    %c0_i32 = arith.constant 0 : i32
    %c0_i32_0 = arith.constant 0 : i32
    return %arg0, %c0_i32 : i32, i32
  }
}

</mosaic_0001>

<bundles_post_ra>
// kernel: tpu_custom_call.1
= control target key start
LH: loop header
LB: loop body
LE: loop exit
PB: predicated region body
PF: predicated region fallthrough
CT: control target
= control target key end

     0   :  { %12 = vsyncpa [#allocation3], 0  ;;  %s682_s0 = inlined_call_operand.vmem [shape: s32[8,1], index: 0, kind: input, shape index: {}]   ;;  %s683_s1 = inlined_call_operand.vmem [shape: f32[8,128], index: 1, kind: input, shape index: {}]   ;;  %s684_s2 = inlined_call_operand.hbm [shape: f32[8,128], index: 2, kind: input, shape index: {}]   ;;  %s685_s3 = inlined_call_operand.hbm [shape: f32[128,128], index: 3, kind: input, shape index: {}]   ;;  %s686_s4 = inlined_call_operand.vmem [shape: f32[1,128], index: 4, kind: input, shape index: {}]   ;;  %s687_s5 = inlined_call_operand.hbm [shape: f32[128,128], index: 5, kind: input, shape index: {}]   ;;  %s688_s6 = inlined_call_operand.vmem [shape: f32[1,128], index: 6, kind: input, shape index: {}]   ;;  %s689_s7 = inlined_call_operand.hbm [shape: f32[8,128], index: 7, kind: output, shape index: {}]  }
   0x1   :  { %13 = vsyncpa [#allocation6], 0 }
   0x2   :  { %14 = vsyncpa [#allocation4], 0  ;;  %s569_s24 = smov [#allocation5]  }
   0x3   :  { %s34_s25 = sshll.u32 %s569_s24, 4  ;;  %s35_s25 = int_to_ptr.vmem [resolvable:$true] %s34_s25 }
   0x4   :  { %s491_s26 = scalar_lea.vmem %s35_s25, 2048  ;;  %p496_p1 = scmp.lt.s32.totalorder %s35_s25, %s35_s25 }
   0x5   :  { %p492_p0 = scmp.ne.s32.totalorder %s35_s25, %s491_s26  ;;  %p497_p2 = scmp.lt.s32.totalorder %s491_s26, %s491_s26 }
   0x7   :  { %p498_p3 = por %p497_p2, %p496_p1 }
   0x9   :  { %p499_p4 = pnand %p498_p3, %p492_p0 }
   0xb   :  { %502 = shalt.err (!%p499_p4)
}
   0xc   :  { %s570_s27 = smov 128   ;;  %s571_s28 = smov 8  }
   0xd   :  { %40 = dma.hbm_to_vmem [thread:$0]  %s685_s3, 2048, %s35_s25, [#allocation6], %s570_s27, %s570_s27, %s571_s28  }
   0xe   :  { %s572_s8 = smov [#allocation2]   ;;  %s573_s10 = smov [#allocation7]  }
   0xf   :  { %s25_s9 = sshll.u32 %s572_s8, 4  ;;  %s48_s11 = sshll.u32 %s573_s10, 4  ;;  %s26_s9 = int_to_ptr.vmem [resolvable:$true] %s25_s9  ;;  %s49_s11 = int_to_ptr.vmem [resolvable:$true] %s48_s11 }
  0x10   :  { %s511_s12 = scalar_lea.vmem %s26_s9, 128  ;;  %p516_p6 = scmp.lt.s32.totalorder %s26_s9, %s26_s9 }
  0x11   :  { %p512_p5 = scmp.ne.s32.totalorder %s26_s9, %s511_s12  ;;  %p517_p7 = scmp.lt.s32.totalorder %s511_s12, %s511_s12 }
  0x13   :  { %p518_p8 = por %p517_p7, %p516_p6 }
  0x15   :  { %p519_p9 = pnand %p518_p8, %p512_p5 }
  0x17   :  { %522 = shalt.err (!%p519_p9)
}
  0x18   :  { %28 = dma.hbm_to_vmem [thread:$0]  %s684_s2, 128, %s26_s9, [#allocation3]  }
  0x19   :  { %s531_s15 = scalar_lea.vmem %s49_s11, 2048  ;;  %p536_p11 = scmp.lt.s32.totalorder %s49_s11, %s49_s11 }
  0x1a   :  { %p532_p10 = scmp.ne.s32.totalorder %s49_s11, %s531_s15  ;;  %p537_p12 = scmp.lt.s32.totalorder %s531_s15, %s531_s15 }
  0x1c   :  { %p538_p13 = por %p537_p12, %p536_p11 }
  0x1e   :  { %p539_p0 = pnand %p538_p13, %p532_p10 }
  0x20   :  { %542 = shalt.err (!%p539_p0)
}
  0x21   :  { %54 = dma.hbm_to_vmem [thread:$0]  %s687_s5, 2048, %s49_s11, [#allocation6], %s570_s27, %s570_s27, %s571_s28  }
  0x22   :  { %563 = dma.done.wait [#allocation3], 128  }
  0x23   :  { %564 = vsyncadd [#allocation3], 4294967168 }
  0x24   :  { %565 = dma.done.wait [#allocation6], 4096  }
  0x25   :  { %566 = vsyncadd [#allocation6], 4294963200  ;;  %v574_v0 = vmov 0.0   ;;  %vm575_vm0 = vmmov 0   ;;  %v576_v1 = vmov 0   ;;  %v166_v2 = vld [vmem:[#allocation5 + $0x78] sm:$0xff]  ;;  %v67_v21 = vlaneseq }
  0x26   :  { %403 = vmatprep.subr.mxu1 %v574_v0  ;;  %435 = vmatprep.mubr.msk.f32.mxu1 %vm575_vm0, %v574_v0  ;;  %v165_v3 = vld [vmem:[#allocation5 + $0x70] sm:$0xff]  ;;  %v164_v4 = vld [vmem:[#allocation5 + $0x68] sm:$0xff]  ;;  %v163_v5 = vld [vmem:[#allocation5 + $0x60] sm:$0xff]  ;;  %vm76_vm1 = vcmask 64512   ;;  %s577_s21 = smov [#allocation8]  }
  0x27   :  { %482 = vset.pattern.permute.xlu0 %v576_v1  ;;  %398 = vmatprep.subr.mxu0 %v574_v0  ;;  %v66_v6 = vld [vmem:[%s682_s0] sm:$0xff]  ;;  %v161_v9 = vld [vmem:[#allocation5 + $0x50] sm:$0xff]  ;;  %v160_v10 = vld [vmem:[#allocation5 + $0x48] sm:$0xff]  ;;  %v68_v22 = vand.u32 127, %v67_v21  ;;  %s348_s22 = sshll.u32 %s577_s21, 4  ;;  %s349_s22 = int_to_ptr.vmem [resolvable:$true] %s348_s22 }
  0x28   :  { %400 = vmatprep.mubr.msk.f32.mxu0 %vm575_vm0, %v574_v0  ;;  %404 = vmatpush3.msra.mxu1 %v166_v2  ;;  %v162_v7 = vld [vmem:[#allocation5 + $0x58] sm:$0xff]  ;;  %v159_v11 = vld [vmem:[#allocation5 + $0x40] sm:$0xff]  ;;  %v157_v13 = vld [vmem:[#allocation5 + $0x30] sm:$0xff]  ;;  %p548_p2 = scmp.lt.s32.totalorder %s349_s22, %s349_s22 }
  0x29   :  { %405 = vmatprep.subr.mxu1 %v574_v0  ;;  %70 = vperm.xlu0 %482, %v66_v6   ;;  %v75_v8 = vld [vmem:[%s683_s1] sm:$0xff]  ;;  %v156_v14 = vld [vmem:[#allocation5 + $0x28] sm:$0xff]  ;;  %v155_v15 = vld [vmem:[#allocation5 + $0x20] sm:$0xff] }
  0x2a   :  { %406 = vmatpush3.msra.mxu1 %v165_v3  ;;  %399 = vmatpush3.msra.mxu0 %v75_v8  ;;  %v158_v12 = vld [vmem:[#allocation5 + $0x38] sm:$0xff]  ;;  %v153_v17 = vld [vmem:[#allocation5 + $0x10] sm:$0xff]  ;;  %v152_v18 = vld [vmem:[#allocation5 + $0x8] sm:$0xff] }
  0x2b   :  { %407 = vmatprep.subr.mxu1 %v574_v0  ;;  %438 = vmatprep.subr.mxu0 %v574_v0  ;;  %v154_v16 = vld [vmem:[#allocation5 + $0x18] sm:$0xff]  ;;  %v151_v19 = vld [vmem:[#allocation5] sm:$0xff]  ;;  %v182_v26 = vld [vmem:[#allocation7 + $0x70] sm:$0xff] }
  0x2c   :  { %408 = vmatpush3.msra.mxu1 %v164_v4  ;;  %v150_v20 = vld [vmem:[#allocation2] sm:$0xff]  ;;  %v181_v27 = vld [vmem:[#allocation7 + $0x68] sm:$0xff]  ;;  %v180_v28 = vld [vmem:[#allocation7 + $0x60] sm:$0xff] }
  0x2d   :  { %409 = vmatprep.subr.mxu1 %v574_v0  ;;  %v183_v24 = vld [vmem:[#allocation7 + $0x78] sm:$0xff]  ;;  %v178_v30 = vld [vmem:[#allocation7 + $0x50] sm:$0xff]  ;;  %v177_v31 = vld [vmem:[#allocation7 + $0x48] sm:$0xff] }
  0x2e   :  { %410 = vmatpush3.msra.mxu1 %v163_v5  ;;  %v179_v29 = vld [vmem:[#allocation7 + $0x58] sm:$0xff]  ;;  %v176_v32 = vld [vmem:[#allocation7 + $0x40] sm:$0xff]  ;;  %v174_v34 = vld [vmem:[#allocation7 + $0x30] sm:$0xff] }
  0x2f   :  { %411 = vmatprep.subr.mxu1 %v574_v0  ;;  %v175_v33 = vld [vmem:[#allocation7 + $0x38] sm:$0xff]  ;;  %v173_v35 = vld [vmem:[#allocation7 + $0x28] sm:$0xff]  ;;  %v172_v36 = vld [vmem:[#allocation7 + $0x20] sm:$0xff] }
  0x30   :  { %412 = vmatpush3.msra.mxu1 %v162_v7  ;;  %v171_v37 = vld [vmem:[#allocation7 + $0x18] sm:$0xff]  ;;  %v170_v38 = vld [vmem:[#allocation7 + $0x10] sm:$0xff]  ;;  %v169_v39 = vld [vmem:[#allocation7 + $0x8] sm:$0xff] }
  0x31   :  { %413 = vmatprep.subr.mxu1 %v574_v0  ;;  %v168_v40 = vld [vmem:[#allocation7] sm:$0xff]  ;;  %v360_v41 = vld [vmem:[%s686_s4] ss:$0 sm:$0xff]  ;;  %s543_s4 = scalar_lea.vmem %s349_s22, 128 }
  0x32   :  { %414 = vmatpush3.msra.mxu1 %v161_v9  ;;  %v361_v48 = vld [vmem:[%s688_s6] ss:$0 sm:$0xff]  ;;  %p544_p1 = scmp.ne.s32.totalorder %s349_s22, %s543_s4  ;;  %p549_p3 = scmp.lt.s32.totalorder %s543_s4, %s543_s4 }
  0x33   :  { %415 = vmatprep.subr.mxu1 %v574_v0 }
  0x34   :  { %416 = vmatpush3.msra.mxu1 %v160_v10  ;;  %p550_p4 = por %p549_p3, %p548_p2 }
  0x35   :  { %417 = vmatprep.subr.mxu1 %v574_v0 }
  0x36   :  { %418 = vmatpush3.msra.mxu1 %v159_v11  ;;  %p551_p5 = pnand %p550_p4, %p544_p1 }
  0x37   :  { %419 = vmatprep.subr.mxu1 %v574_v0 }
  0x38   :  { %420 = vmatpush3.msra.mxu1 %v158_v12 }
  0x39   :  { %421 = vmatprep.subr.mxu1 %v574_v0 }
  0x3a   :  { %422 = vmatpush3.msra.mxu1 %v157_v13 }
  0x3b   :  { %423 = vmatprep.subr.mxu1 %v574_v0 }
  0x3c   :  { %424 = vmatpush3.msra.mxu1 %v156_v14 }
  0x3d   :  { %425 = vmatprep.subr.mxu1 %v574_v0 }
  0x3e   :  { %426 = vmatpush3.msra.mxu1 %v155_v15 }
  0x3f   :  { %427 = vmatprep.subr.mxu1 %v574_v0 }
  0x40   :  { %428 = vmatpush3.msra.mxu1 %v154_v16 }
  0x41   :  { %429 = vmatprep.subr.mxu1 %v574_v0 }
  0x42   :  { %430 = vmatpush3.msra.mxu1 %v153_v17 }
  0x43   :  { %431 = vmatprep.subr.mxu1 %v574_v0 }
  0x44   :  { %432 = vmatpush3.msra.mxu1 %v152_v18 }
  0x45   :  { %433 = vmatprep.subr.mxu1 %v574_v0 }
  0x46   :  { %434 = vmatpush3.msra.mxu1 %v151_v19 }
  0x47   :  { %436 = vmatmul.mubr.f32.vlgmr.msra.gmra.mxu1 %v150_v20 }
  0xa4   :  { %v71_v23 = vpop.permute.xlu0 %70 }
  0xa5   :  { %vm72_vm2 = vcmp.eq.s32.totalorder %v71_v23, %v68_v22 }
  0xa6   :  { %v358_v25 = vsel %vm72_vm2, 1.0, %v574_v0 }
  0xa7   :  { %401 = vmatmul.mubr.msk.f32.vlgmr.msra.gmra.mxu0 %vm76_vm1, %v358_v25 }
  0xa8   :  { %439 = vmatpush3.msra.mxu0 %v183_v24  ;;  %470 = vmatprep.mubr.msk.f32.mxu0 %vm575_vm0, %v574_v0 }
  0xa9   :  { %440 = vmatprep.subr.mxu0 %v574_v0 }
  0xaa   :  { %441 = vmatpush3.msra.mxu0 %v182_v26 }
  0xab   :  { %442 = vmatprep.subr.mxu0 %v574_v0 }
  0xac   :  { %443 = vmatpush3.msra.mxu0 %v181_v27 }
  0xad   :  { %444 = vmatprep.subr.mxu0 %v574_v0 }
  0xae   :  { %445 = vmatpush3.msra.mxu0 %v180_v28 }
  0xaf   :  { %446 = vmatprep.subr.mxu0 %v574_v0 }
  0xb0   :  { %447 = vmatpush3.msra.mxu0 %v179_v29 }
  0xb1   :  { %448 = vmatprep.subr.mxu0 %v574_v0 }
  0xb2   :  { %449 = vmatpush3.msra.mxu0 %v178_v30 }
  0xb3   :  { %450 = vmatprep.subr.mxu0 %v574_v0 }
  0xb4   :  { %451 = vmatpush3.msra.mxu0 %v177_v31 }
  0xb5   :  { %452 = vmatprep.subr.mxu0 %v574_v0 }
  0xb6   :  { %453 = vmatpush3.msra.mxu0 %v176_v32 }
  0xb7   :  { %454 = vmatprep.subr.mxu0 %v574_v0 }
  0xb8   :  { %455 = vmatpush3.msra.mxu0 %v175_v33 }
  0xb9   :  { %456 = vmatprep.subr.mxu0 %v574_v0 }
  0xba   :  { %457 = vmatpush3.msra.mxu0 %v174_v34 }
  0xbb   :  { %458 = vmatprep.subr.mxu0 %v574_v0 }
  0xbc   :  { %459 = vmatpush3.msra.mxu0 %v173_v35 }
  0xbd   :  { %460 = vmatprep.subr.mxu0 %v574_v0 }
  0xbe   :  { %461 = vmatpush3.msra.mxu0 %v172_v36 }
  0xbf   :  { %462 = vmatprep.subr.mxu0 %v574_v0 }
  0xc0   :  { %463 = vmatpush3.msra.mxu0 %v171_v37 }
  0xc1   :  { %464 = vmatprep.subr.mxu0 %v574_v0 }
  0xc2   :  { %465 = vmatpush3.msra.mxu0 %v170_v38 }
  0xc3   :  { %466 = vmatprep.subr.mxu0 %v574_v0 }
  0xc4   :  { %467 = vmatpush3.msra.mxu0 %v169_v39 }
  0xc5   :  { %468 = vmatprep.subr.mxu0 %v574_v0 }
  0xc6   :  { %469 = vmatpush3.msra.mxu0 %v168_v40 }
 0x107   :  { %v257_v42 = vpop.f32.mrf.mxu1 }
 0x108   :  { %v258_v43 = vadd.f32 %v360_v41, %v257_v42 }
 0x109   :  { %v437_v44 = vpop.f32.mrf.mxu1 }
 0x10a   :  { %v261_v45 = vmax.f32 %v258_v43, 0.0 }
 0x10c   :  { %471 = vmatmul.mubr.f32.vlgmr.msra.gmra.mxu0 %v261_v45 }
 0x167   :  { %v146_v46 = vpop.f32.mrf.mxu0 }
 0x169   :  { %v402_v47 = vpop.f32.mrf.mxu0 }
 0x1cc   :  { %v334_v49 = vpop.f32.mrf.mxu0 }
 0x1cd   :  { %v335_v50 = vadd.f32 %v361_v48, %v334_v49 }
 0x1ce   :  { %v472_v51 = vpop.f32.mrf.mxu0 }
 0x1cf   :  { %v338_v52 = vmul.f32 %v335_v50, %v146_v46 }
 0x1d1   :  { %v339_v53 = vmul.f32 %v338_v52, %v335_v50 }
 0x1d3   :  { %v340_v54 = vadd.f32 %v339_v53, %v335_v50 }
 0x1d5   :  { %341 = vst [vmem:[#allocation8] sm:$0xff] %v340_v54 }
 0x1d6   :  { %554 = shalt.err (!%p551_p5)
}
 0x1d7   :  { %351 = dma.vmem_to_hbm [thread:$0]  %s349_s22, 128, %s689_s7, [#allocation4]  }
 0x1d8   :  { %567 = dma.done.wait [#allocation4], 128  }
 0x1d9   :  { %568 = vsyncadd [#allocation4], 4294967168 }
 0x1da   :  { %355 = vsyncpa [#allocation3], 1 }
 0x1db   :  { %356 = vsyncpa [#allocation6], 1 }
 0x1dc   :  { %357 = vsyncpa [#allocation4], 1 }

</bundles_post_ra>
